<compile_context>
chip_gen: v6e
topology: v6e:2x2x1
jax: 0.10.0
libtpu: 0.0.40
codegen_flags: <defaults>
</compile_context>

<pallas_src>
import jax
import jax.numpy as jnp
import numpy as np
from jax.experimental import pallas as pl
from jax.experimental.pallas import tpu as pltpu


# ---------------------------------------------------------------------------
# Fused MLP kernel: (tm, Dp) x (Dp,256) -> softplus -> x(256,256) -> softplus
#                   -> x(256, Dp) + biases, all resident in VMEM.
# ---------------------------------------------------------------------------
def _softplus(x):
    # PyTorch Softplus(beta=1, threshold=20): x if x > 20 else log1p(exp(x)).
    # Clamp the exp argument so no inf intermediate is produced.
    return jnp.where(x > 20.0, x, jnp.log1p(jnp.exp(jnp.minimum(x, 20.0))))


def _mlp_score_kernel(x_ref, w1_ref, b1_ref, w2_ref, b2_ref, w3_ref, b3_ref,
                      o_ref):
    h = jnp.dot(x_ref[...], w1_ref[...], preferred_element_type=jnp.float32)
    h = _softplus(h + b1_ref[...])
    h = jnp.dot(h, w2_ref[...], preferred_element_type=jnp.float32)
    h = _softplus(h + b2_ref[...])
    o = jnp.dot(h, w3_ref[...], preferred_element_type=jnp.float32)
    o_ref[...] = (o + b3_ref[...]).astype(o_ref.dtype)


# ---------------------------------------------------------------------------
# Wrapper: padding to lane/sublane-friendly shapes + pallas_call
# ---------------------------------------------------------------------------
def _round_up(x, m):
    return (x + m - 1) // m * m


def _pick_tm(m_pad):
    # Prefer a tile that yields >= 2 grid steps (v7x has 2 TensorCores); each
    # tile is 8-row (sublane) aligned.
    for cand in (512, 256, 128, 64, 32, 16, 8):
        if m_pad % cand == 0 and m_pad // cand >= 2:
            return cand
    return m_pad


def mlp_score_forward(params, x):
    """x: (B, dim) f32 -> (B, dim) f32."""
    B, dim = x.shape
    H = params["w1"].shape[0]                      # hidden = 256 (lane aligned)
    assert H % 128 == 0

    dim_pad = _round_up(max(dim, 128), 128)        # lane-dense in/out blocks
    m_pad = max(_round_up(B, 8), 16)               # >=2 grid steps (v7x)
    tm = _pick_tm(m_pad)

    # Zero-pad input rows/cols; zero-pad weight rows (layer 1) and weight cols
    # + bias (layer 3) so the padded lanes compute exact zeros.
    xp = jnp.pad(x, ((0, m_pad - B), (0, dim_pad - dim)))
    w1p = jnp.pad(params["w1"].T, ((0, dim_pad - dim), (0, 0)))   # (Dp, H)
    b1p = params["b1"].reshape(1, H)
    w2p = params["w2"].T                                          # (H, H)
    b2p = params["b2"].reshape(1, H)
    w3p = jnp.pad(params["w3"].T, ((0, 0), (0, dim_pad - dim)))   # (H, Dp)
    b3p = jnp.pad(params["b3"], (0, dim_pad - dim)).reshape(1, dim_pad)

    out = pl.pallas_call(
        _mlp_score_kernel,
        out_shape=jax.ShapeDtypeStruct((m_pad, dim_pad), jnp.float32),
        grid=(m_pad // tm,),
        in_specs=[
            pl.BlockSpec((tm, dim_pad), lambda i: (i, 0)),
            pl.BlockSpec((dim_pad, H), lambda i: (0, 0)),
            pl.BlockSpec((1, H), lambda i: (0, 0)),
            pl.BlockSpec((H, H), lambda i: (0, 0)),
            pl.BlockSpec((1, H), lambda i: (0, 0)),
            pl.BlockSpec((H, dim_pad), lambda i: (0, 0)),
            pl.BlockSpec((1, dim_pad), lambda i: (0, 0)),
        ],
        out_specs=pl.BlockSpec((tm, dim_pad), lambda i: (i, 0)),
        compiler_params=pltpu.CompilerParams(
            dimension_semantics=("parallel",)),
    )(xp, w1p, b1p, w2p, b2p, w3p, b3p)

    return out[:B, :dim]


# ---------------------------------------------------------------------------
# Parameters (PyTorch nn.Linear default init) + pure-JAX reference
# ---------------------------------------------------------------------------
def init_params(key, dim, hidden=256):
    ks = jax.random.split(key, 6)

    def u(k, shape, fan_in):
        bound = 1.0 / np.sqrt(fan_in)
        return jax.random.uniform(k, shape, jnp.float32, -bound, bound)

    return {
        "w1": u(ks[0], (hidden, dim), dim),      # Linear(dim, 256).weight
        "b1": u(ks[1], (hidden,), dim),
        "w2": u(ks[2], (hidden, hidden), hidden),  # Linear(256, 256).weight
        "b2": u(ks[3], (hidden,), hidden),
        "w3": u(ks[4], (dim, hidden), hidden),   # Linear(256, dim).weight
        "b3": u(ks[5], (dim,), hidden),
    }


def mlp_score_ref(params, x):
    h = jax.nn.softplus(x @ params["w1"].T + params["b1"])
    h = jax.nn.softplus(h @ params["w2"].T + params["b2"])
    return h @ params["w3"].T + params["b3"]


if __name__ == "__main__":
    DIM = 32      # self.dim
    BATCH = 8

    key = jax.random.PRNGKey(0)
    pkey, xkey = jax.random.split(key)
    params = init_params(pkey, DIM)
    x = jax.random.normal(xkey, (BATCH, DIM), jnp.float32)

    out = jax.jit(mlp_score_forward)(params, x)
    out = jax.block_until_ready(out)

    ref = mlp_score_ref(params, x)
    np.testing.assert_allclose(np.asarray(out), np.asarray(ref),
                               rtol=1e-4, atol=1e-5)
    assert out.shape == (BATCH, DIM)
    print("KERNEL_OK")
</pallas_src>

<mosaic_0001>
module attributes {stable_mosaic.version = 11 : i64} {
  func.func @_mlp_score_kernel(%arg0: i32, %arg1: memref<8x128xf32, #tpu.memory_space<vmem>>, %arg2: memref<128x256xf32, #tpu.memory_space<vmem>>, %arg3: memref<1x256xf32, #tpu.memory_space<vmem>>, %arg4: memref<256x256xf32, #tpu.memory_space<vmem>>, %arg5: memref<1x256xf32, #tpu.memory_space<vmem>>, %arg6: memref<256x128xf32, #tpu.memory_space<vmem>>, %arg7: memref<1x128xf32, #tpu.memory_space<vmem>>, %arg8: memref<8x128xf32, #tpu.memory_space<vmem>>) attributes {dimension_semantics = [#tpu.dimension_semantics<parallel>], iteration_bounds = array<i64: 2>, scalar_prefetch = 0 : i64, scratch_operands = 0 : i64, tpu.core_type = #tpu.core_type<tc>, window_params = [{transform_indices = @transform_0, window_bounds = array<i64: 8, 128>}, {pipeline_mode = #tpu.pipeline_mode<synchronous>, transform_indices = @transform_1, window_bounds = array<i64: 128, 256>}, {pipeline_mode = #tpu.pipeline_mode<synchronous>, transform_indices = @transform_2, window_bounds = array<i64: 1, 256>}, {pipeline_mode = #tpu.pipeline_mode<synchronous>, transform_indices = @transform_3, window_bounds = array<i64: 256, 256>}, {pipeline_mode = #tpu.pipeline_mode<synchronous>, transform_indices = @transform_4, window_bounds = array<i64: 1, 256>}, {pipeline_mode = #tpu.pipeline_mode<synchronous>, transform_indices = @transform_5, window_bounds = array<i64: 256, 128>}, {pipeline_mode = #tpu.pipeline_mode<synchronous>, transform_indices = @transform_6, window_bounds = array<i64: 1, 128>}, {transform_indices = @transform_7, window_bounds = array<i64: 8, 128>}]} {
    %c0 = arith.constant 0 : index
    %c0_0 = arith.constant 0 : index
    %0 = vector.load %arg1[%c0, %c0_0] : memref<8x128xf32, #tpu.memory_space<vmem>>, vector<8x128xf32>
    %c0_1 = arith.constant 0 : index
    %c0_2 = arith.constant 0 : index
    %1 = vector.load %arg2[%c0_1, %c0_2] : memref<128x256xf32, #tpu.memory_space<vmem>>, vector<128x256xf32>
    %cst = arith.constant dense<0.000000e+00> : vector<8x256xf32>
    %2 = tpu.matmul %0, %1, %cst {dimension_numbers = #tpu.dot_dimension_numbers<[1], [0], [0], [1], [0, 0, 1, 1], [], []>} : vector<8x128xf32>, vector<128x256xf32>, vector<8x256xf32> -> vector<8x256xf32>
    %c0_3 = arith.constant 0 : index
    %c0_4 = arith.constant 0 : index
    %3 = vector.load %arg3[%c0_3, %c0_4] : memref<1x256xf32, #tpu.memory_space<vmem>>, vector<1x256xf32>
    %4 = vector.broadcast %3 : vector<1x256xf32> to vector<8x256xf32>
    %5 = arith.addf %2, %4 : vector<8x256xf32>
    %cst_5 = arith.constant 2.000000e+01 : f32
    %6 = vector.broadcast %cst_5 : f32 to vector<8x256xf32>
    %7 = arith.cmpf ogt, %5, %6 : vector<8x256xf32>
    %cst_6 = arith.constant 2.000000e+01 : f32
    %8 = vector.broadcast %cst_6 : f32 to vector<8x256xf32>
    %9 = arith.minimumf %5, %8 : vector<8x256xf32>
    %10 = math.exp %9 : vector<8x256xf32>
    %11 = math.log1p %10 : vector<8x256xf32>
    %12 = arith.select %7, %5, %11 : vector<8x256xi1>, vector<8x256xf32>
    %c0_7 = arith.constant 0 : index
    %c0_8 = arith.constant 0 : index
    %13 = vector.load %arg4[%c0_7, %c0_8] : memref<256x256xf32, #tpu.memory_space<vmem>>, vector<256x256xf32>
    %cst_9 = arith.constant dense<0.000000e+00> : vector<8x256xf32>
    %14 = tpu.matmul %12, %13, %cst_9 {dimension_numbers = #tpu.dot_dimension_numbers<[1], [0], [0], [1], [0, 0, 1, 1], [], []>} : vector<8x256xf32>, vector<256x256xf32>, vector<8x256xf32> -> vector<8x256xf32>
    %c0_10 = arith.constant 0 : index
    %c0_11 = arith.constant 0 : index
    %15 = vector.load %arg5[%c0_10, %c0_11] : memref<1x256xf32, #tpu.memory_space<vmem>>, vector<1x256xf32>
    %16 = vector.broadcast %15 : vector<1x256xf32> to vector<8x256xf32>
    %17 = arith.addf %14, %16 : vector<8x256xf32>
    %cst_12 = arith.constant 2.000000e+01 : f32
    %18 = vector.broadcast %cst_12 : f32 to vector<8x256xf32>
    %19 = arith.cmpf ogt, %17, %18 : vector<8x256xf32>
    %cst_13 = arith.constant 2.000000e+01 : f32
    %20 = vector.broadcast %cst_13 : f32 to vector<8x256xf32>
    %21 = arith.minimumf %17, %20 : vector<8x256xf32>
    %22 = math.exp %21 : vector<8x256xf32>
    %23 = math.log1p %22 : vector<8x256xf32>
    %24 = arith.select %19, %17, %23 : vector<8x256xi1>, vector<8x256xf32>
    %c0_14 = arith.constant 0 : index
    %c0_15 = arith.constant 0 : index
    %25 = vector.load %arg6[%c0_14, %c0_15] : memref<256x128xf32, #tpu.memory_space<vmem>>, vector<256x128xf32>
    %cst_16 = arith.constant dense<0.000000e+00> : vector<8x128xf32>
    %26 = tpu.matmul %24, %25, %cst_16 {dimension_numbers = #tpu.dot_dimension_numbers<[1], [0], [0], [1], [0, 0, 1, 1], [], []>} : vector<8x256xf32>, vector<256x128xf32>, vector<8x128xf32> -> vector<8x128xf32>
    %c0_17 = arith.constant 0 : index
    %c0_18 = arith.constant 0 : index
    %27 = vector.load %arg7[%c0_17, %c0_18] : memref<1x128xf32, #tpu.memory_space<vmem>>, vector<1x128xf32>
    %28 = vector.broadcast %27 : vector<1x128xf32> to vector<8x128xf32>
    %29 = arith.addf %26, %28 : vector<8x128xf32>
    %c0_19 = arith.constant 0 : index
    %c0_20 = arith.constant 0 : index
    %30 = vector.load %arg8[%c0_19, %c0_20] : memref<8x128xf32, #tpu.memory_space<vmem>>, vector<8x128xf32>
    tpu.vector_store %arg8[%c0_19, %c0_20], %29 {strides = array<i32>} : memref<8x128xf32, #tpu.memory_space<vmem>>, vector<8x128xf32>,
    return
  }
  func.func @transform_0(%arg0: i32) -> (i32, i32) {
    %c0_i32 = arith.constant 0 : i32
    %c0_i32_0 = arith.constant 0 : i32
    return %arg0, %c0_i32 : i32, i32
  }
  func.func @transform_1(%arg0: i32) -> (i32, i32) {
    %c0_i32 = arith.constant 0 : i32
    %c0_i32_0 = arith.constant 0 : i32
    %c0_i32_1 = arith.constant 0 : i32
    return %c0_i32, %c0_i32_0 : i32, i32
  }
  func.func @transform_2(%arg0: i32) -> (i32, i32) {
    %c0_i32 = arith.constant 0 : i32
    %c0_i32_0 = arith.constant 0 : i32
    %c0_i32_1 = arith.constant 0 : i32
    return %c0_i32, %c0_i32_0 : i32, i32
  }
  func.func @transform_3(%arg0: i32) -> (i32, i32) {
    %c0_i32 = arith.constant 0 : i32
    %c0_i32_0 = arith.constant 0 : i32
    %c0_i32_1 = arith.constant 0 : i32
    return %c0_i32, %c0_i32_0 : i32, i32
  }
  func.func @transform_4(%arg0: i32) -> (i32, i32) {
    %c0_i32 = arith.constant 0 : i32
    %c0_i32_0 = arith.constant 0 : i32
    %c0_i32_1 = arith.constant 0 : i32
    return %c0_i32, %c0_i32_0 : i32, i32
  }
  func.func @transform_5(%arg0: i32) -> (i32, i32) {
    %c0_i32 = arith.constant 0 : i32
    %c0_i32_0 = arith.constant 0 : i32
    %c0_i32_1 = arith.constant 0 : i32
    return %c0_i32, %c0_i32_0 : i32, i32
  }
  func.func @transform_6(%arg0: i32) -> (i32, i32) {
    %c0_i32 = arith.constant 0 : i32
    %c0_i32_0 = arith.constant 0 : i32
    %c0_i32_1 = arith.constant 0 : i32
    return %c0_i32, %c0_i32_0 : i32, i32
  }
  func.func @transform_7(%arg0: i32) -> (i32, i32) {
    %c0_i32 = arith.constant 0 : i32
    %c0_i32_0 = arith.constant 0 : i32
    return %arg0, %c0_i32 : i32, i32
  }
}

</mosaic_0001>

<bundles_post_ra>
// kernel: mlp_score_forward.1
= control target key start
LH: loop header
LB: loop body
LE: loop exit
PB: predicated region body
PF: predicated region fallthrough
CT: control target
= control target key end

     0   :  { %s875_s24 = smov 0   ;;  %s1314_s0 = inlined_call_operand.vmem [shape: f32[16,128], index: 0, kind: input, shape index: {}]   ;;  %s1315_s1 = inlined_call_operand.vmem [shape: f32[128,256], index: 1, kind: input, shape index: {}]   ;;  %s1316_s2 = inlined_call_operand.vmem [shape: f32[1,256], index: 2, kind: input, shape index: {}]   ;;  %s1317_s3 = inlined_call_operand.vmem [shape: f32[256,256], index: 3, kind: input, shape index: {}]   ;;  %s1318_s4 = inlined_call_operand.vmem [shape: f32[1,256], index: 4, kind: input, shape index: {}]   ;;  %s1319_s5 = inlined_call_operand.vmem [shape: f32[256,128], index: 5, kind: input, shape index: {}]   ;;  %s1320_s6 = inlined_call_operand.vmem [shape: f32[1,128], index: 6, kind: input, shape index: {}]   ;;  %s1321_s7 = inlined_call_operand.vmem [shape: f32[16,128], index: 7, kind: output, shape index: {}]  }
   0x1 LB: > { %s756_s25 = sadd.s32 4294967295, %s832_s24   ;;  %p760_p0 = scmp.ge.s32.totalorder %s832_s24, 1  ;;  %s832_s24 = sphi %s875_s24, %s17_s24  }
   0x2   : > { %p236_p1 = scmp.lt.s32.totalorder %s832_s24, 3 }
   0x4   : > { %p237_p2 = pnand %p760_p0, %p236_p1 }
   0x5   : > { %p963_p3 = scmp.lt.s32.totalorder (!%p237_p2), %s756_s25, 1 }
   0x6   : > { %240 = sbr.rel (%p237_p2) target bundleno = 716 (0x2cc), region = 48 }
   0xb   : > { %v306_v0 = vld [vmem:[%s1315_s1 + $0xf8] sm:$0xff]  ;;  %v305_v1 = vld [vmem:[%s1315_s1 + $0xf0] sm:$0xff]  ;;  %v304_v2 = vld [vmem:[%s1315_s1 + $0xe8] sm:$0xff]  ;;  %v834_v4 = vmov 0.0   ;;  %s1324_s25 = smov (!%p963_p3, %s756_s25), 1 }
   0xc   : > { %319 = vmatprep.subr.mxu0 %v306_v0  ;;  %v303_v3 = vld [vmem:[%s1315_s1 + $0xe0] sm:$0xff]  ;;  %383 = vmatprep.mubr.f32.mxu0 %v834_v4  ;;  %v302_v5 = vld [vmem:[%s1315_s1 + $0xd8] sm:$0xff]  ;;  %v301_v6 = vld [vmem:[%s1315_s1 + $0xd0] sm:$0xff]  ;;  %s761_s27 = sshll.u32 %s1324_s25, 3 }
   0xd   : > { %320 = vmatpush1.msra.mxu0 %v305_v1  ;;  %v300_v7 = vld [vmem:[%s1315_s1 + $0xc8] sm:$0xff]  ;;  %v299_v8 = vld [vmem:[%s1315_s1 + $0xc0] sm:$0xff]  ;;  %v298_v9 = vld [vmem:[%s1315_s1 + $0xb8] sm:$0xff]  ;;  %s269_s19 = scalar_lea.vmem %s1314_s0, %s761_s27  ;;  %s273_s8 = scalar_lea.vmem %s1321_s7, %s761_s27 }
   0xe   : > { %321 = vmatprep.subr.mxu0 %v304_v2  ;;  %v297_v10 = vld [vmem:[%s1315_s1 + $0xb0] sm:$0xff]  ;;  %v296_v11 = vld [vmem:[%s1315_s1 + $0xa8] sm:$0xff]  ;;  %v295_v12 = vld [vmem:[%s1315_s1 + $0xa0] sm:$0xff] }
   0xf   : > { %322 = vmatpush1.msra.mxu0 %v303_v3  ;;  %v294_v13 = vld [vmem:[%s1315_s1 + $0x98] sm:$0xff]  ;;  %v293_v14 = vld [vmem:[%s1315_s1 + $0x90] sm:$0xff]  ;;  %v447_v17 = vld [vmem:[%s1317_s3 + $0xe8] sm:$0xff] }
  0x10   : > { %323 = vmatprep.subr.mxu0 %v302_v5  ;;  %v449_v15 = vld [vmem:[%s1317_s3 + $0xf8] sm:$0xff]  ;;  %v448_v16 = vld [vmem:[%s1317_s3 + $0xf0] sm:$0xff]  ;;  %v292_v18 = vld [vmem:[%s1315_s1 + $0x88] sm:$0xff] }
  0x11   : > { %324 = vmatpush1.msra.mxu0 %v301_v6  ;;  %494 = vmatprep.subr.mxu1 %v449_v15  ;;  %v446_v19 = vld [vmem:[%s1317_s3 + $0xe0] sm:$0xff]  ;;  %v445_v21 = vld [vmem:[%s1317_s3 + $0xd8] sm:$0xff]  ;;  %v444_v23 = vld [vmem:[%s1317_s3 + $0xd0] sm:$0xff] }
  0x12   : > { %325 = vmatprep.subr.mxu0 %v300_v7  ;;  %v291_v20 = vld [vmem:[%s1315_s1 + $0x80] sm:$0xff]  ;;  %495 = vmatpush1.msra.mxu1 %v448_v16  ;;  %v290_v22 = vld [vmem:[%s1315_s1 + $0x78] sm:$0xff]  ;;  %v289_v24 = vld [vmem:[%s1315_s1 + $0x70] sm:$0xff] }
  0x13   : > { %326 = vmatpush1.msra.mxu0 %v299_v8  ;;  %496 = vmatprep.subr.mxu1 %v447_v17  ;;  %v443_v25 = vld [vmem:[%s1317_s3 + $0xc8] sm:$0xff]  ;;  %v442_v27 = vld [vmem:[%s1317_s3 + $0xc0] sm:$0xff]  ;;  %v441_v29 = vld [vmem:[%s1317_s3 + $0xb8] sm:$0xff] }
  0x14   : > { %327 = vmatprep.subr.mxu0 %v298_v9  ;;  %497 = vmatpush1.msra.mxu1 %v446_v19  ;;  %v288_v26 = vld [vmem:[%s1315_s1 + $0x68] sm:$0xff]  ;;  %v287_v28 = vld [vmem:[%s1315_s1 + $0x60] sm:$0xff]  ;;  %v286_v30 = vld [vmem:[%s1315_s1 + $0x58] sm:$0xff] }
  0x15   : > { %328 = vmatpush1.msra.mxu0 %v297_v10  ;;  %498 = vmatprep.subr.mxu1 %v445_v21  ;;  %v440_v31 = vld [vmem:[%s1317_s3 + $0xb0] sm:$0xff]  ;;  %v439_v33 = vld [vmem:[%s1317_s3 + $0xa8] sm:$0xff]  ;;  %v438_v35 = vld [vmem:[%s1317_s3 + $0xa0] sm:$0xff] }
  0x16   : > { %329 = vmatprep.subr.mxu0 %v296_v11  ;;  %499 = vmatpush1.msra.mxu1 %v444_v23  ;;  %v285_v32 = vld [vmem:[%s1315_s1 + $0x50] sm:$0xff]  ;;  %v284_v34 = vld [vmem:[%s1315_s1 + $0x48] sm:$0xff]  ;;  %v283_v36 = vld [vmem:[%s1315_s1 + $0x40] sm:$0xff] }
  0x17   : > { %330 = vmatpush1.msra.mxu0 %v295_v12  ;;  %500 = vmatprep.subr.mxu1 %v443_v25  ;;  %v437_v37 = vld [vmem:[%s1317_s3 + $0x98] sm:$0xff]  ;;  %v436_v39 = vld [vmem:[%s1317_s3 + $0x90] sm:$0xff]  ;;  %v435_v41 = vld [vmem:[%s1317_s3 + $0x88] sm:$0xff] }
  0x18   : > { %331 = vmatprep.subr.mxu0 %v294_v13  ;;  %501 = vmatpush1.msra.mxu1 %v442_v27  ;;  %v282_v38 = vld [vmem:[%s1315_s1 + $0x38] sm:$0xff]  ;;  %v281_v40 = vld [vmem:[%s1315_s1 + $0x30] sm:$0xff]  ;;  %v280_v42 = vld [vmem:[%s1315_s1 + $0x28] sm:$0xff] }
  0x19   : > { %332 = vmatpush1.msra.mxu0 %v293_v14  ;;  %502 = vmatprep.subr.mxu1 %v441_v29  ;;  %v434_v43 = vld [vmem:[%s1317_s3 + $0x80] sm:$0xff]  ;;  %v433_v45 = vld [vmem:[%s1317_s3 + $0x78] sm:$0xff]  ;;  %v432_v47 = vld [vmem:[%s1317_s3 + $0x70] sm:$0xff] }
  0x1a   : > { %333 = vmatprep.subr.mxu0 %v292_v18  ;;  %503 = vmatpush1.msra.mxu1 %v440_v31  ;;  %v279_v44 = vld [vmem:[%s1315_s1 + $0x20] sm:$0xff]  ;;  %v278_v46 = vld [vmem:[%s1315_s1 + $0x18] sm:$0xff]  ;;  %v277_v48 = vld [vmem:[%s1315_s1 + $0x10] sm:$0xff] }
  0x1b   : > { %334 = vmatpush1.msra.mxu0 %v291_v20  ;;  %504 = vmatprep.subr.mxu1 %v439_v33  ;;  %v431_v49 = vld [vmem:[%s1317_s3 + $0x68] sm:$0xff]  ;;  %v430_v51 = vld [vmem:[%s1317_s3 + $0x60] sm:$0xff]  ;;  %v429_v54 = vld [vmem:[%s1317_s3 + $0x58] sm:$0xff] }
  0x1c   : > { %335 = vmatprep.subr.mxu0 %v290_v22  ;;  %505 = vmatpush1.msra.mxu1 %v438_v35  ;;  %v276_v50 = vld [vmem:[%s1315_s1 + $0x8] sm:$0xff]  ;;  %v275_v52 = vld [vmem:[%s1315_s1] sm:$0xff]  ;;  %v428_v55 = vld [vmem:[%s1317_s3 + $0x50] sm:$0xff] }
  0x1d   : > { %336 = vmatpush1.msra.mxu0 %v289_v24  ;;  %506 = vmatprep.subr.mxu1 %v437_v37  ;;  %v274_v53 = vld [vmem:[%s269_s19] sm:$0xff]  ;;  %v427_v56 = vld [vmem:[%s1317_s3 + $0x48] sm:$0xff]  ;;  %v425_v58 = vld [vmem:[%s1317_s3 + $0x38] sm:$0xff] }
  0x1e   : > { %337 = vmatprep.subr.mxu0 %v288_v26  ;;  %507 = vmatpush1.msra.mxu1 %v436_v39  ;;  %v426_v57 = vld [vmem:[%s1317_s3 + $0x40] sm:$0xff]  ;;  %v424_v59 = vld [vmem:[%s1317_s3 + $0x30] sm:$0xff]  ;;  %v423_v60 = vld [vmem:[%s1317_s3 + $0x28] sm:$0xff] }
  0x1f   : > { %338 = vmatpush1.msra.mxu0 %v287_v28  ;;  %508 = vmatprep.subr.mxu1 %v435_v41  ;;  %v422_v61 = vld [vmem:[%s1317_s3 + $0x20] sm:$0xff]  ;;  %v421_v62 = vld [vmem:[%s1317_s3 + $0x18] sm:$0xff]  ;;  %v420_v63 = vld [vmem:[%s1317_s3 + $0x10] sm:$0xff] }
  0x20   : > { %339 = vmatprep.subr.mxu0 %v286_v30  ;;  %509 = vmatpush1.msra.mxu1 %v434_v43  ;;  %v419_v0 = vld [vmem:[%s1317_s3 + $0x8] sm:$0xff]  ;;  %v418_v1 = vld [vmem:[%s1317_s3] sm:$0xff]  ;;  %v481_v2 = vld [vmem:[%s1317_s3 + $0x1f8] sm:$0xff] }
  0x21   : > { %340 = vmatpush1.msra.mxu0 %v285_v32  ;;  %510 = vmatprep.subr.mxu1 %v433_v45  ;;  %v480_v3 = vld [vmem:[%s1317_s3 + $0x1f0] sm:$0xff]  ;;  %v479_v4 = vld [vmem:[%s1317_s3 + $0x1e8] sm:$0xff]  ;;  %v478_v5 = vld [vmem:[%s1317_s3 + $0x1e0] sm:$0xff] }
  0x22   : > { %341 = vmatprep.subr.mxu0 %v284_v34  ;;  %511 = vmatpush1.msra.mxu1 %v432_v47  ;;  %v477_v6 = vld [vmem:[%s1317_s3 + $0x1d8] sm:$0xff]  ;;  %v476_v7 = vld [vmem:[%s1317_s3 + $0x1d0] sm:$0xff]  ;;  %v475_v8 = vld [vmem:[%s1317_s3 + $0x1c8] sm:$0xff]  ;;  %v309_v34 = vlaneseq }
  0x23   : > { %342 = vmatpush1.msra.mxu0 %v283_v36  ;;  %512 = vmatprep.subr.mxu1 %v431_v49  ;;  %v474_v9 = vld [vmem:[%s1317_s3 + $0x1c0] sm:$0xff]  ;;  %v473_v10 = vld [vmem:[%s1317_s3 + $0x1b8] sm:$0xff]  ;;  %v472_v11 = vld [vmem:[%s1317_s3 + $0x1b0] sm:$0xff] }
  0x24   : > { %343 = vmatprep.subr.mxu0 %v282_v38  ;;  %513 = vmatpush1.msra.mxu1 %v430_v51  ;;  %v471_v12 = vld [vmem:[%s1317_s3 + $0x1a8] sm:$0xff]  ;;  %v470_v13 = vld [vmem:[%s1317_s3 + $0x1a0] sm:$0xff]  ;;  %v469_v14 = vld [vmem:[%s1317_s3 + $0x198] sm:$0xff]  ;;  %v1189_v35 = vshrl.u32 %v309_v34, 7 }
  0x25   : > { %344 = vmatpush1.msra.mxu0 %v281_v40  ;;  %514 = vmatprep.subr.mxu1 %v429_v54  ;;  %v468_v15 = vld [vmem:[%s1317_s3 + $0x190] sm:$0xff]  ;;  %v467_v16 = vld [vmem:[%s1317_s3 + $0x188] sm:$0xff]  ;;  %v466_v17 = vld [vmem:[%s1317_s3 + $0x180] sm:$0xff] }
  0x26   : > { %345 = vmatprep.subr.mxu0 %v280_v42  ;;  %515 = vmatpush1.msra.mxu1 %v428_v55  ;;  %v465_v18 = vld [vmem:[%s1317_s3 + $0x178] sm:$0xff]  ;;  %v464_v19 = vld [vmem:[%s1317_s3 + $0x170] sm:$0xff]  ;;  %v463_v20 = vld [vmem:[%s1317_s3 + $0x168] sm:$0xff]  ;;  %v311_v36 = vsub.s32 0, %v1189_v35  ;;  %v315_v38 = vsub.s32 1, %v1189_v35 }
  0x27   : > { %346 = vmatpush1.msra.mxu0 %v279_v44  ;;  %516 = vmatprep.subr.mxu1 %v427_v56  ;;  %v462_v21 = vld [vmem:[%s1317_s3 + $0x160] sm:$0xff]  ;;  %v461_v22 = vld [vmem:[%s1317_s3 + $0x158] sm:$0xff]  ;;  %v460_v23 = vld [vmem:[%s1317_s3 + $0x150] sm:$0xff] }
  0x28   : > { %347 = vmatprep.subr.mxu0 %v278_v46  ;;  %517 = vmatpush1.msra.mxu1 %v426_v57  ;;  %v459_v24 = vld [vmem:[%s1317_s3 + $0x148] sm:$0xff]  ;;  %v458_v25 = vld [vmem:[%s1317_s3 + $0x140] sm:$0xff]  ;;  %v457_v26 = vld [vmem:[%s1317_s3 + $0x138] sm:$0xff] }
  0x29   : > { %348 = vmatpush1.msra.mxu0 %v277_v48  ;;  %518 = vmatprep.subr.mxu1 %v425_v58  ;;  %v456_v27 = vld [vmem:[%s1317_s3 + $0x130] sm:$0xff]  ;;  %v455_v28 = vld [vmem:[%s1317_s3 + $0x128] sm:$0xff]  ;;  %v454_v29 = vld [vmem:[%s1317_s3 + $0x120] sm:$0xff] }
  0x2a   : > { %349 = vmatprep.subr.mxu0 %v276_v50  ;;  %519 = vmatpush1.msra.mxu1 %v424_v59  ;;  %v453_v30 = vld [vmem:[%s1317_s3 + $0x118] sm:$0xff]  ;;  %v452_v31 = vld [vmem:[%s1317_s3 + $0x110] sm:$0xff]  ;;  %v451_v32 = vld [vmem:[%s1317_s3 + $0x108] sm:$0xff] }
  0x2b   : > { %350 = vmatpush1.msra.mxu0 %v275_v52  ;;  %520 = vmatprep.subr.mxu1 %v423_v60  ;;  %v450_v33 = vld [vmem:[%s1317_s3 + $0x100] sm:$0xff]  ;;  %v594_v34 = vld [vmem:[%s1319_s5 + $0x8] sm:$0xff] }
  0x2c   : > { %384 = vmatmul.mubr.f32.vlgmr.msra.gmra.mxu0 %v274_v53  ;;  %521 = vmatpush1.msra.mxu1 %v422_v61  ;;  %v307_v37 = vld [vmem:[%s1316_s2] sm:$0x3] }
  0x2d   : > { %522 = vmatprep.subr.mxu1 %v421_v62  ;;  %v312_v39 = vrot.slane %v307_v37, %v311_v36  ;;  %v316_v40 = vrot.slane %v307_v37, %v315_v38  ;;  %v609_v37 = vld [vmem:[%s1319_s5 + $0x80] sm:$0xff] }
  0x2e   : > { %523 = vmatpush1.msra.mxu1 %v420_v63 }
  0x2f   : > { %524 = vmatprep.subr.mxu1 %v419_v0 }
  0x30   : > { %525 = vmatpush1.msra.mxu1 %v418_v1 }
  0x31   : > { %526 = vmatprep.subr.mxu1 %v481_v2 }
  0x32   : > { %527 = vmatpush2.msra.mxu1 %v480_v3 }
  0x33   : > { %528 = vmatprep.subr.mxu1 %v479_v4 }
  0x34   : > { %529 = vmatpush2.msra.mxu1 %v478_v5  ;;  %v624_v5 = vld [vmem:[%s1319_s5 + $0xf8] sm:$0xff] }
  0x35   : > { %530 = vmatprep.subr.mxu1 %v477_v6  ;;  %v608_v6 = vld [vmem:[%s1319_s5 + $0x78] sm:$0xff]  ;;  %766 = vmatprep.subr.mxu0 %v624_v5  ;;  %v763_v5 = vld [vmem:[%s1320_s6] ss:$0 sm:$0xff] }
  0x36   : > { %531 = vmatpush2.msra.mxu1 %v476_v7  ;;  %v623_v7 = vld [vmem:[%s1319_s5 + $0xf0] sm:$0xff]  ;;  %767 = vmatpush3.msra.mxu0 %v608_v6 }
  0x37   : > { %532 = vmatprep.subr.mxu1 %v475_v8  ;;  %v607_v8 = vld [vmem:[%s1319_s5 + $0x70] sm:$0xff]  ;;  %768 = vmatprep.subr.mxu0 %v623_v7 }
  0x38   : > { %533 = vmatpush2.msra.mxu1 %v474_v9  ;;  %v622_v9 = vld [vmem:[%s1319_s5 + $0xe8] sm:$0xff]  ;;  %769 = vmatpush3.msra.mxu0 %v607_v8 }
  0x39   : > { %534 = vmatprep.subr.mxu1 %v473_v10  ;;  %v606_v10 = vld [vmem:[%s1319_s5 + $0x68] sm:$0xff]  ;;  %770 = vmatprep.subr.mxu0 %v622_v9 }
  0x3a   : > { %535 = vmatpush2.msra.mxu1 %v472_v11  ;;  %v621_v11 = vld [vmem:[%s1319_s5 + $0xe0] sm:$0xff]  ;;  %771 = vmatpush3.msra.mxu0 %v606_v10 }
  0x3b   : > { %536 = vmatprep.subr.mxu1 %v471_v12  ;;  %v605_v12 = vld [vmem:[%s1319_s5 + $0x60] sm:$0xff]  ;;  %772 = vmatprep.subr.mxu0 %v621_v11 }
  0x3c   : > { %537 = vmatpush2.msra.mxu1 %v470_v13  ;;  %v620_v13 = vld [vmem:[%s1319_s5 + $0xd8] sm:$0xff]  ;;  %773 = vmatpush3.msra.mxu0 %v605_v12 }
  0x3d   : > { %538 = vmatprep.subr.mxu1 %v469_v14  ;;  %v604_v14 = vld [vmem:[%s1319_s5 + $0x58] sm:$0xff]  ;;  %774 = vmatprep.subr.mxu0 %v620_v13 }
  0x3e   : > { %539 = vmatpush2.msra.mxu1 %v468_v15  ;;  %v619_v15 = vld [vmem:[%s1319_s5 + $0xd0] sm:$0xff]  ;;  %775 = vmatpush3.msra.mxu0 %v604_v14 }
  0x3f   : > { %540 = vmatprep.subr.mxu1 %v467_v16  ;;  %v603_v16 = vld [vmem:[%s1319_s5 + $0x50] sm:$0xff]  ;;  %776 = vmatprep.subr.mxu0 %v619_v15 }
  0x40   : > { %541 = vmatpush2.msra.mxu1 %v466_v17  ;;  %v618_v17 = vld [vmem:[%s1319_s5 + $0xc8] sm:$0xff]  ;;  %777 = vmatpush3.msra.mxu0 %v603_v16 }
  0x41   : > { %542 = vmatprep.subr.mxu1 %v465_v18  ;;  %v602_v18 = vld [vmem:[%s1319_s5 + $0x48] sm:$0xff]  ;;  %778 = vmatprep.subr.mxu0 %v618_v17 }
  0x42   : > { %543 = vmatpush2.msra.mxu1 %v464_v19  ;;  %v617_v19 = vld [vmem:[%s1319_s5 + $0xc0] sm:$0xff]  ;;  %779 = vmatpush3.msra.mxu0 %v602_v18 }
  0x43   : > { %544 = vmatprep.subr.mxu1 %v463_v20  ;;  %v601_v20 = vld [vmem:[%s1319_s5 + $0x40] sm:$0xff]  ;;  %780 = vmatprep.subr.mxu0 %v617_v19 }
  0x44   : > { %545 = vmatpush2.msra.mxu1 %v462_v21  ;;  %v616_v21 = vld [vmem:[%s1319_s5 + $0xb8] sm:$0xff]  ;;  %781 = vmatpush3.msra.mxu0 %v601_v20 }
  0x45   : > { %546 = vmatprep.subr.mxu1 %v461_v22  ;;  %v600_v22 = vld [vmem:[%s1319_s5 + $0x38] sm:$0xff]  ;;  %782 = vmatprep.subr.mxu0 %v616_v21 }
  0x46   : > { %547 = vmatpush2.msra.mxu1 %v460_v23  ;;  %v615_v23 = vld [vmem:[%s1319_s5 + $0xb0] sm:$0xff]  ;;  %783 = vmatpush3.msra.mxu0 %v600_v22 }
  0x47   : > { %548 = vmatprep.subr.mxu1 %v459_v24  ;;  %v599_v24 = vld [vmem:[%s1319_s5 + $0x30] sm:$0xff]  ;;  %784 = vmatprep.subr.mxu0 %v615_v23 }
  0x48   : > { %549 = vmatpush2.msra.mxu1 %v458_v25  ;;  %v614_v25 = vld [vmem:[%s1319_s5 + $0xa8] sm:$0xff]  ;;  %785 = vmatpush3.msra.mxu0 %v599_v24 }
  0x49   : > { %550 = vmatprep.subr.mxu1 %v457_v26  ;;  %v598_v26 = vld [vmem:[%s1319_s5 + $0x28] sm:$0xff]  ;;  %786 = vmatprep.subr.mxu0 %v614_v25 }
  0x4a   : > { %551 = vmatpush2.msra.mxu1 %v456_v27  ;;  %v613_v27 = vld [vmem:[%s1319_s5 + $0xa0] sm:$0xff]  ;;  %787 = vmatpush3.msra.mxu0 %v598_v26 }
  0x4b   : > { %552 = vmatprep.subr.mxu1 %v455_v28  ;;  %v597_v28 = vld [vmem:[%s1319_s5 + $0x20] sm:$0xff]  ;;  %788 = vmatprep.subr.mxu0 %v613_v27 }
  0x4c   : > { %553 = vmatpush2.msra.mxu1 %v454_v29  ;;  %v612_v29 = vld [vmem:[%s1319_s5 + $0x98] sm:$0xff]  ;;  %789 = vmatpush3.msra.mxu0 %v597_v28 }
  0x4d   : > { %554 = vmatprep.subr.mxu1 %v453_v30  ;;  %v596_v30 = vld [vmem:[%s1319_s5 + $0x18] sm:$0xff]  ;;  %790 = vmatprep.subr.mxu0 %v612_v29 }
  0x4e   : > { %555 = vmatpush2.msra.mxu1 %v452_v31  ;;  %v611_v31 = vld [vmem:[%s1319_s5 + $0x90] sm:$0xff]  ;;  %791 = vmatpush3.msra.mxu0 %v596_v30 }
  0x4f   : > { %556 = vmatprep.subr.mxu1 %v451_v32  ;;  %v595_v32 = vld [vmem:[%s1319_s5 + $0x10] sm:$0xff]  ;;  %792 = vmatprep.subr.mxu0 %v611_v31 }
  0x50   : > { %557 = vmatpush2.msra.mxu1 %v450_v33  ;;  %v610_v33 = vld [vmem:[%s1319_s5 + $0x88] sm:$0xff]  ;;  %793 = vmatpush3.msra.mxu0 %v595_v32 }
  0x51   : > { %794 = vmatprep.subr.mxu0 %v610_v33 }
  0x52   : > { %795 = vmatpush3.msra.mxu0 %v594_v34 }
  0x53   : > { %796 = vmatprep.subr.mxu0 %v609_v37 }
  0xec   : > { %v385_v41 = vpop.f32.mrf.mxu0 }
  0xed   : > { %v386_v42 = vadd.f32 %v385_v41, %v312_v39  ;;  %v593_v39 = vld [vmem:[%s1319_s5] sm:$0xff] }
  0xee   : > { %v387_v43 = vpop.f32.mrf.mxu0  ;;  %797 = vmatpush3.msra.mxu0 %v593_v39 }
  0xef   : > { %v392_v44 = vmin.f32 %v386_v42, 20.0  ;;  %v388_v45 = vadd.f32 %v387_v43, %v316_v40  ;;  %vm390_vm3 = vcmp.gt.f32.partialorder %v386_v42, 20.0  ;;  %v482_v40 = vld [vmem:[%s1318_s4] sm:$0x3] }
  0xf0   : > { %v487_v41 = vrot.slane %v482_v40, %v311_v36 }
  0xf1   : > { %v394_v46 = vmul.f32 1.442695, %v392_v44  ;;  %v393_v47 = vmin.f32 %v388_v45, 20.0  ;;  %vm391_vm2 = vcmp.gt.f32.partialorder %v388_v45, 20.0 }
  0xf3   : > { %810 = vpow2.f32 %v394_v46  ;;  %v396_v48 = vmul.f32 1.442695, %v393_v47 }
  0xf5   : > { %812 = vpow2.f32 %v396_v48 }
 0x100   : > { %v811_v49 = vpop.eup %810 }
 0x101   : > { %v398_v50 = vadd.f32 1.0, %v811_v49  ;;  %v401_v53 = vmul.f32 -0.5, %v811_v49  ;;  %v404_v57 = vand.u32 2147483647, %v811_v49 }
 0x102   : > { %v813_v51 = vpop.eup %812 }
 0x103   : > { %v407_v52 = vadd.f32 1.0, %v813_v51  ;;  %814 = vlog2.f32 %v398_v50  ;;  %v410_v54 = vmul.f32 -0.5, %v813_v51  ;;  %v402_v55 = vadd.f32 1.0, %v401_v53 }
 0x104   : > { %v413_v59 = vand.u32 2147483647, %v813_v51  ;;  %vm405_vm0 = vcmp.lt.f32.partialorder %v404_v57, 0.0004427343 }
 0x105   : > { %816 = vlog2.f32 %v407_v52  ;;  %v411_v56 = vadd.f32 1.0, %v410_v54  ;;  %v403_v62 = vmul.f32 %v811_v49, %v402_v55 }
 0x106   : > { %vm414_vm1 = vcmp.lt.f32.partialorder %v413_v59, 0.0004427343 }
 0x107   : > { %v412_v0 = vmul.f32 %v813_v51, %v411_v56 }
 0x110   : > { %v815_v58 = vpop.eup %814 }
 0x111   : > { %v400_v60 = vmul.f32 0.6931472, %v815_v58 }
 0x112   : > { %v817_v61 = vpop.eup %816 }
 0x113   : > { %v409_v63 = vmul.f32 0.6931472, %v817_v61  ;;  %v406_v1 = vsel %vm405_vm0, %v403_v62, %v400_v60 }
 0x114   : > { %v416_v4 = vsel %vm390_vm3, %v386_v42, %v406_v1  ;;  %v491_v42 = vrot.slane %v482_v40, %v315_v38 }
 0x115   : > { %v415_v2 = vsel %vm414_vm1, %v412_v0, %v409_v63 }
 0x116   : > { %v417_v3 = vsel %vm391_vm2, %v388_v45, %v415_v2 }
 0x117   : > { %558 = vmatprep.mubr.f32.mxu1 %v417_v3 }
 0x118   : > { %559 = vmatmul.mubr.f32.vlgmr.msra.gmra.mxu1 %v416_v4 }
 0x1d8   : > { %v560_v43 = vpop.f32.mrf.mxu1 }
 0x1d9   : > { %v561_v44 = vadd.f32 %v560_v43, %v487_v41 }
 0x1da   : > { %v562_v45 = vpop.f32.mrf.mxu1 }
 0x1db   : > { %v567_v46 = vmin.f32 %v561_v44, 20.0  ;;  %v563_v47 = vadd.f32 %v562_v45, %v491_v42  ;;  %vm565_vm7 = vcmp.gt.f32.partialorder %v561_v44, 20.0 }
 0x1dd   : > { %v569_v48 = vmul.f32 1.442695, %v567_v46  ;;  %v568_v49 = vmin.f32 %v563_v47, 20.0  ;;  %vm566_vm6 = vcmp.gt.f32.partialorder %v563_v47, 20.0 }
 0x1df   : > { %818 = vpow2.f32 %v569_v48  ;;  %v571_v50 = vmul.f32 1.442695, %v568_v49 }
 0x1e1   : > { %820 = vpow2.f32 %v571_v50 }
 0x1ec   : > { %v819_v51 = vpop.eup %818 }
 0x1ed   : > { %v573_v52 = vadd.f32 1.0, %v819_v51  ;;  %v576_v36 = vmul.f32 -0.5, %v819_v51  ;;  %v579_v56 = vand.u32 2147483647, %v819_v51 }
 0x1ee   : > { %v821_v53 = vpop.eup %820 }
 0x1ef   : > { %v582_v54 = vadd.f32 1.0, %v821_v53  ;;  %822 = vlog2.f32 %v573_v52  ;;  %v585_v55 = vmul.f32 -0.5, %v821_v53  ;;  %v577_v35 = vadd.f32 1.0, %v576_v36 }
 0x1f0   : > { %v588_v58 = vand.u32 2147483647, %v821_v53  ;;  %vm580_vm4 = vcmp.lt.f32.partialorder %v579_v56, 0.0004427343 }
 0x1f1   : > { %824 = vlog2.f32 %v582_v54  ;;  %v586_v38 = vadd.f32 1.0, %v585_v55  ;;  %v578_v61 = vmul.f32 %v819_v51, %v577_v35 }
 0x1f2   : > { %vm589_vm5 = vcmp.lt.f32.partialorder %v588_v58, 0.0004427343 }
 0x1f3   : > { %v587_v63 = vmul.f32 %v821_v53, %v586_v38 }
 0x1fc   : > { %v823_v57 = vpop.eup %822 }
 0x1fd   : > { %v575_v59 = vmul.f32 0.6931472, %v823_v57 }
 0x1fe   : > { %v825_v60 = vpop.eup %824 }
 0x1ff   : > { %v584_v62 = vmul.f32 0.6931472, %v825_v60  ;;  %v581_v0 = vsel %vm580_vm4, %v578_v61, %v575_v59 }
 0x200   : > { %v591_v3 = vsel %vm565_vm7, %v561_v44, %v581_v0 }
 0x201   : > { %v590_v1 = vsel %vm589_vm5, %v587_v63, %v584_v62 }
 0x202   : > { %v592_v2 = vsel %vm566_vm6, %v563_v47, %v590_v1 }
 0x203   : > { %696 = vmatprep.mubr.f32.mxu0 %v592_v2 }
 0x204   : > { %697 = vmatmul.mubr.f32.vlgmr.msra.gmra.mxu0 %v591_v3 }
 0x2c4   : > { %v798_v4 = vpop.f32.mrf.mxu0 }
 0x2c6   : > { %v799_v6 = vpop.f32.mrf.mxu0 }
 0x2c7   : > { %v800_v7 = vadd.f32 %v799_v6, %v798_v4 }
 0x2c9   : > { %v699_v8 = vadd.f32 %v800_v7, %v763_v5 }
 0x2cb   : > { %702 = vst [vmem:[%s273_s8] sm:$0xff] %v699_v8 }
 0x2cc PF: > { %s17_s24 = sadd.s32 1, %s832_s24  }
 0x2cd   : > { %p14_p4 = scmp.ge.s32.totalorder %s17_s24, 4  }
 0x2cf   :  { %16 = sbr.rel (!%p14_p4) target bundleno = 1 (0x1), region = 78 }

</bundles_post_ra>
